<compile_context>
chip_gen: v7x
topology: tpu7x:2x2x1
jax: 0.10.0
libtpu: 0.0.40
codegen_flags: <defaults>
</compile_context>

<pallas_src>
import functools
import math

import jax
import jax.numpy as jnp
from jax.experimental import pallas as pl
from jax.experimental.pallas import tpu as pltpu


# --------------------------------------------------------------------------- #
# Hardware-aware sizing helpers
# --------------------------------------------------------------------------- #
def _tpu_vmem_bytes():
    try:
        info = pltpu.get_tpu_info()
        for name in ("vmem_capacity_bytes", "vmem_bytes"):
            v = getattr(info, name, None)
            if v:
                return int(v)
    except Exception:
        pass
    return 64 * 1024 * 1024  # assume the smallest generation (v7x) when unknown


def _tile_budget_bytes():
    # Combined (all fused inputs) per-step input-tile budget. Double-buffered
    # input + output tiles plus f32 temporaries must stay well inside scoped
    # VMEM on every generation (v5e 16 MiB default .. v7x 64 MiB physical).
    return 4 * 1024 * 1024 if _tpu_vmem_bytes() >= 128 * 1024 * 1024 else 2 * 1024 * 1024


def _vmem_limit_bytes():
    # Raise the scoped limit, but never above the smallest physical VMEM.
    return 64 * 1024 * 1024 if _tpu_vmem_bytes() >= 128 * 1024 * 1024 else 32 * 1024 * 1024


def _pick_block_s(S, h_total, D, itemsize, B):
    """Seq-block size: multiple of 8 sublanes, fits the VMEM tile budget,
    never the whole-sequence fallback, and >= 2 grid steps when B == 1."""
    budget = _tile_budget_bytes()
    row_bytes = max(1, h_total * D * itemsize)
    cap = max(8, (budget // row_bytes) // 8 * 8)

    if S <= cap:
        block_s = S  # full seq dim is always a legal block (== array dim)
    else:
        block_s = cap
        # Prefer a multiple-of-8 divisor of S (no ragged tail); otherwise keep
        # cap and let the cdiv grid handle the partial last block.
        for bs in range(cap, 7, -8):
            if S % bs == 0:
                block_s = bs
                break

    # Guarantee >= 2 grid steps (v7x has 2 TensorCores sharing HBM).
    if B * pl.cdiv(S, block_s) < 2 and S > 8:
        block_s = max(8, (S // 2) // 8 * 8)
    return block_s


# --------------------------------------------------------------------------- #
# Kernel
# --------------------------------------------------------------------------- #
def _rope_kernel(pos_ref, invf_ref, *refs, rope_rank, n_inputs):
    """One (batch, seq-block) step: fused cos/sin + rotation for all inputs.

    pos_ref : (1, block_s, 1) f32   positions for this block
    invf_ref: (1, D)          f32   per-lane frequency (already repeated/concat)
    refs    : n_inputs x_refs of shape (1, H_i, block_s, D) followed by the
              matching n_inputs o_refs.
    """
    x_refs = refs[:n_inputs]
    o_refs = refs[n_inputs:]

    theta = pos_ref[0] * invf_ref[...]          # (block_s, D) -- no divides / exp
    cos = jnp.cos(theta)                        # f32, once per block (EUP)
    sin = jnp.sin(theta)
    d = theta.shape[-1]

    if rope_rank == "adjacent":
        # x2[2j] = -x[2j+1], x2[2j+1] = x[2j]; lane-only (1,1,D) mask.
        lane = jax.lax.broadcasted_iota(jnp.int32, (1, 1, d), 2)
        even = (lane & 1) == 0
        for x_ref, o_ref in zip(x_refs, o_refs):
            x = x_ref[0]                                     # (H, block_s, D)
            last = x.ndim - 1                                # positive axis!
            nxt = pltpu.roll(x, shift=d - 1, axis=last)      # nxt[i] = x[i+1]
            prv = pltpu.roll(x, shift=1, axis=last)          # prv[i] = x[i-1]
            x2 = jnp.where(even, -nxt, prv)
            cos_x = cos[None].astype(x.dtype)
            sin_x = sin[None].astype(x.dtype)
            o_ref[0] = x * cos_x + x2 * sin_x
    else:  # 'updown' / 'rotate_half'
        # x2 = concat(-x[..., d/2:], x[..., :d/2]) = sign(lane) * roll(x, d/2);
        # fold the sign into sin ONCE per block (no per-head select).
        lane = jax.lax.broadcasted_iota(jnp.int32, (1, d), 1)
        sign = jnp.where(lane < d // 2, jnp.float32(-1.0), jnp.float32(1.0))
        sin_signed = sin * sign                              # (block_s, D)
        for x_ref, o_ref in zip(x_refs, o_refs):
            x = x_ref[0]
            last = x.ndim - 1
            rolled = pltpu.roll(x, shift=d // 2, axis=last)
            cos_x = cos[None].astype(x.dtype)
            sins_x = sin_signed[None].astype(x.dtype)
            o_ref[0] = x * cos_x + rolled * sins_x


# --------------------------------------------------------------------------- #
# pallas_call wrapper
# --------------------------------------------------------------------------- #
def rope_apply(xs, position_ids, inv_freq_full, rope_rank, block_s=None):
    """Apply RoPE to one or more arrays of shape (B, H_i, S, D) sharing
    position_ids (B, S). All inputs are rotated in a single fused kernel."""
    xs = tuple(xs)
    B, _, S, D = xs[0].shape
    for x in xs:
        assert x.ndim == 4 and x.shape[0] == B and x.shape[2] == S and x.shape[3] == D
    assert position_ids.shape == (B, S), position_ids.shape
    assert D % 2 == 0, "head dim must be even for RoPE"

    pos = position_ids.astype(jnp.float32).reshape(B, S, 1)
    invf = inv_freq_full.reshape(1, D).astype(jnp.float32)

    itemsize = max(jnp.dtype(x.dtype).itemsize for x in xs)
    h_total = sum(x.shape[1] for x in xs)
    if block_s is None:
        block_s = _pick_block_s(S, h_total, D, itemsize, B)

    n = len(xs)
    kernel = functools.partial(_rope_kernel, rope_rank=rope_rank, n_inputs=n)
    grid = (B, pl.cdiv(S, block_s))

    in_specs = [
        pl.BlockSpec((1, block_s, 1), lambda b, s: (b, s, 0)),
        pl.BlockSpec((1, D), lambda b, s: (0, 0)),
    ]
    x_specs = [
        pl.BlockSpec((1, x.shape[1], block_s, D), lambda b, s: (b, 0, s, 0))
        for x in xs
    ]
    out_specs = [
        pl.BlockSpec((1, x.shape[1], block_s, D), lambda b, s: (b, 0, s, 0))
        for x in xs
    ]
    out_shape = [jax.ShapeDtypeStruct(x.shape, x.dtype) for x in xs]

    outs = pl.pallas_call(
        kernel,
        out_shape=out_shape,
        grid=grid,
        in_specs=in_specs + x_specs,
        out_specs=out_specs,
        compiler_params=pltpu.CompilerParams(
            dimension_semantics=("parallel", "parallel"),
            vmem_limit_bytes=_vmem_limit_bytes()),
    )(pos, invf, *xs)
    return list(outs)


# --------------------------------------------------------------------------- #
# Module wrapper (mirrors the PyTorch RopePositionEncoding forward semantics)
# --------------------------------------------------------------------------- #
class RopePositionEncoding:
    def __init__(self, embedding_size, max_position=2048, rope_rank="adjacent",
                 scaling_factor=1.0, rope_theta=10000.0, **kwargs):
        rope_rank = rope_rank or "adjacent"
        assert rope_rank in {"adjacent", "updown", "rotate_half"}
        self.embedding_size = embedding_size
        self.rope_rank = rope_rank
        self.scaling_factor = scaling_factor if scaling_factor is not None else 1.0
        self.rope_theta = rope_theta or 10000.0
        self.max_position = max_position

        # inv_freq = exp(arange(0, D, 2) * (-log(theta) / D))   (ntk_alpha == 1)
        half = jnp.exp(jnp.arange(0, embedding_size, 2, dtype=jnp.float32)
                       * (-math.log(self.rope_theta) / embedding_size))
        if self.scaling_factor != 1:
            half = half / self.scaling_factor
        self.inv_freq = half
        # Hoist repeat_interleave / concat out of the kernel:
        if rope_rank == "adjacent":
            full = jnp.repeat(half, 2)                   # [f0,f0,f1,f1,...]
        else:  # updown / rotate_half
            full = jnp.concatenate([half, half])         # [f0..f_{D/2-1}, f0..]
        self.inv_freq_full = full

    def __call__(self, qk, position_ids):
        is_list = isinstance(qk, (list, tuple))
        xs = list(qk) if is_list else [qk]
        ndims = [x.ndim for x in xs]
        xs4 = [x[:, None] if x.ndim == 3 else x for x in xs]   # add head axis if absent
        outs = rope_apply(xs4, position_ids, self.inv_freq_full, self.rope_rank)
        outs = [o[:, 0] if nd == 3 else o for o, nd in zip(outs, ndims)]
        return outs if is_list else outs[0]


# --------------------------------------------------------------------------- #
# Pure-JAX reference mirroring the PyTorch math (for validation)
# --------------------------------------------------------------------------- #
def _reference(x, position_ids, embedding_size, rope_rank, rope_theta, scaling_factor):
    D = embedding_size
    inv_freq = jnp.exp(jnp.arange(0, D, 2, dtype=jnp.float32)
                       * (-math.log(rope_theta) / D))
    if scaling_factor != 1:
        inv_freq = inv_freq / scaling_factor
    emb = position_ids.astype(jnp.float32)[:, :, None] * inv_freq[None, None, :]
    cos, sin = jnp.cos(emb), jnp.sin(emb)
    if rope_rank == "adjacent":
        cos = jnp.repeat(cos, 2, axis=-1)
        sin = jnp.repeat(sin, 2, axis=-1)
    else:
        cos = jnp.concatenate([cos, cos], axis=-1)
        sin = jnp.concatenate([sin, sin], axis=-1)
    cos, sin = cos[:, None], sin[:, None]                # (B, 1, S, D)
    if rope_rank == "adjacent":
        x2 = jnp.stack([-x[..., 1::2], x[..., ::2]], axis=-1).reshape(x.shape)
    else:
        x2 = jnp.concatenate([-x[..., D // 2:], x[..., :D // 2]], axis=-1)
    return x * cos + x2 * sin


# --------------------------------------------------------------------------- #
# Demo / test
# --------------------------------------------------------------------------- #
if __name__ == "__main__":
    key = jax.random.PRNGKey(0)
    B, H, S, D = 2, 4, 8, 32
    kq, kk = jax.random.split(key)
    q = jax.random.normal(kq, (B, H, S, D), dtype=jnp.float32)
    k = jax.random.normal(kk, (B, H, S, D), dtype=jnp.float32)
    position_ids = jnp.broadcast_to(jnp.arange(S, dtype=jnp.int32)[None], (B, S))

    for rank in ("adjacent", "rotate_half"):
        rope = RopePositionEncoding(embedding_size=D, max_position=64, rope_rank=rank)
        q_out, k_out = rope([q, k], position_ids)         # fused single pallas_call
        q_out = jax.block_until_ready(q_out)
        k_out = jax.block_until_ready(k_out)

        q_ref = _reference(q, position_ids, D, rank, 10000.0, 1.0)
        k_ref = _reference(k, position_ids, D, rank, 10000.0, 1.0)

        assert q_out.shape == (B, H, S, D), q_out.shape
        assert q_out.dtype == q.dtype, q_out.dtype
        assert jnp.allclose(q_out, q_ref, atol=1e-5, rtol=1e-5), f"q mismatch ({rank})"
        assert jnp.allclose(k_out, k_ref, atol=1e-5, rtol=1e-5), f"k mismatch ({rank})"

    # 3-D (no head axis) single-tensor path
    rope = RopePositionEncoding(embedding_size=D, max_position=64, rope_rank="adjacent")
    q3 = q[:, 0]                                           # (B, S, D)
    q3_out = jax.block_until_ready(rope(q3, position_ids))
    q3_ref = _reference(q3[:, None], position_ids, D, "adjacent", 10000.0, 1.0)[:, 0]
    assert q3_out.shape == (B, S, D)
    assert jnp.allclose(q3_out, q3_ref, atol=1e-5, rtol=1e-5), "q 3-D mismatch"

    print("KERNEL_OK")
</pallas_src>

<mosaic_0001>
module attributes {stable_mosaic.version = 11 : i64} {
  func.func @_rope_kernel(%arg0: i32, %arg1: i32, %arg2: memref<1x8x1xf32, #tpu.memory_space<vmem>>, %arg3: memref<1x32xf32, #tpu.memory_space<vmem>>, %arg4: memref<1x4x8x32xf32, #tpu.memory_space<vmem>>, %arg5: memref<1x4x8x32xf32, #tpu.memory_space<vmem>>, %arg6: memref<1x4x8x32xf32, #tpu.memory_space<vmem>>, %arg7: memref<1x4x8x32xf32, #tpu.memory_space<vmem>>) attributes {dimension_semantics = [#tpu.dimension_semantics<parallel>, #tpu.dimension_semantics<parallel>], iteration_bounds = array<i64: 2, 1>, scalar_prefetch = 0 : i64, scratch_operands = 0 : i64, tpu.core_type = #tpu.core_type<tc>, window_params = [{transform_indices = @transform_0, window_bounds = array<i64: 1, 8, 1>}, {pipeline_mode = #tpu.pipeline_mode<synchronous>, transform_indices = @transform_1, window_bounds = array<i64: 1, 32>}, {transform_indices = @transform_2, window_bounds = array<i64: 1, 4, 8, 32>}, {transform_indices = @transform_3, window_bounds = array<i64: 1, 4, 8, 32>}, {transform_indices = @transform_4, window_bounds = array<i64: 1, 4, 8, 32>}, {transform_indices = @transform_5, window_bounds = array<i64: 1, 4, 8, 32>}]} {
    %c0 = arith.constant 0 : index
    %c0_0 = arith.constant 0 : index
    %c0_1 = arith.constant 0 : index
    %0 = vector.load %arg2[%c0, %c0_0, %c0_1] : memref<1x8x1xf32, #tpu.memory_space<vmem>>, vector<1x8x1xf32>
    %1 = vector.shape_cast %0 : vector<1x8x1xf32> to vector<8x1xf32>
    %c0_2 = arith.constant 0 : index
    %c0_3 = arith.constant 0 : index
    %2 = vector.load %arg3[%c0_2, %c0_3] : memref<1x32xf32, #tpu.memory_space<vmem>>, vector<1x32xf32>
    %3 = vector.broadcast %1 : vector<8x1xf32> to vector<8x32xf32>
    %4 = vector.broadcast %2 : vector<1x32xf32> to vector<8x32xf32>
    %5 = arith.mulf %3, %4 : vector<8x32xf32>
    %6 = math.cos %5 : vector<8x32xf32>
    %7 = math.sin %5 : vector<8x32xf32>
    %8 = tpu.iota {dimensions = array<i32: 2>} : vector<1x1x32xi32>
    %c1_i32 = arith.constant 1 : i32
    %9 = vector.broadcast %c1_i32 : i32 to vector<1x1x32xi32>
    %10 = arith.andi %8, %9 : vector<1x1x32xi32>
    %c0_i32 = arith.constant 0 : i32
    %11 = vector.broadcast %c0_i32 : i32 to vector<1x1x32xi32>
    %12 = arith.cmpi eq, %10, %11 : vector<1x1x32xi32>
    %c0_4 = arith.constant 0 : index
    %c0_5 = arith.constant 0 : index
    %c0_6 = arith.constant 0 : index
    %c0_7 = arith.constant 0 : index
    %13 = vector.load %arg4[%c0_4, %c0_5, %c0_6, %c0_7] : memref<1x4x8x32xf32, #tpu.memory_space<vmem>>, vector<1x4x8x32xf32>
    %14 = vector.shape_cast %13 : vector<1x4x8x32xf32> to vector<4x8x32xf32>
    %c31_i32 = arith.constant 31 : i32
    %15 = tpu.dynamic_rotate %14 by %c31_i32 dim 2 : vector<4x8x32xf32>, i32 -> vector<4x8x32xf32>
    %c1_i32_8 = arith.constant 1 : i32
    %16 = tpu.dynamic_rotate %14 by %c1_i32_8 dim 2 : vector<4x8x32xf32>, i32 -> vector<4x8x32xf32>
    %cst = arith.constant 0.000000e+00 : f32
    %17 = vector.broadcast %cst : f32 to vector<4x8x32xf32>
    %18 = arith.subf %17, %15 : vector<4x8x32xf32>
    %19 = vector.shape_cast %12 : vector<1x1x32xi1> to vector<1x1x32xi1>
    %20 = vector.broadcast %19 : vector<1x1x32xi1> to vector<4x8x32xi1>
    %21 = arith.select %20, %18, %16 : vector<4x8x32xi1>, vector<4x8x32xf32>
    %22 = vector.shape_cast %6 : vector<8x32xf32> to vector<1x8x32xf32>
    %23 = vector.shape_cast %7 : vector<8x32xf32> to vector<1x8x32xf32>
    %24 = vector.broadcast %22 : vector<1x8x32xf32> to vector<4x8x32xf32>
    %25 = arith.mulf %14, %24 : vector<4x8x32xf32>
    %26 = vector.broadcast %23 : vector<1x8x32xf32> to vector<4x8x32xf32>
    %27 = arith.mulf %21, %26 : vector<4x8x32xf32>
    %28 = arith.addf %25, %27 : vector<4x8x32xf32>
    %c0_9 = arith.constant 0 : index
    %c0_10 = arith.constant 0 : index
    %c0_11 = arith.constant 0 : index
    %c0_12 = arith.constant 0 : index
    %29 = vector.load %arg6[%c0_9, %c0_10, %c0_11, %c0_12] : memref<1x4x8x32xf32, #tpu.memory_space<vmem>>, vector<1x4x8x32xf32>
    %30 = vector.shape_cast %29 : vector<1x4x8x32xf32> to vector<4x8x32xf32>
    %31 = vector.shape_cast %28 : vector<4x8x32xf32> to vector<1x4x8x32xf32>
    tpu.vector_store %arg6[%c0_9, %c0_10, %c0_11, %c0_12], %31 {strides = array<i32>} : memref<1x4x8x32xf32, #tpu.memory_space<vmem>>, vector<1x4x8x32xf32>,
    %c0_13 = arith.constant 0 : index
    %c0_14 = arith.constant 0 : index
    %c0_15 = arith.constant 0 : index
    %c0_16 = arith.constant 0 : index
    %32 = vector.load %arg5[%c0_13, %c0_14, %c0_15, %c0_16] : memref<1x4x8x32xf32, #tpu.memory_space<vmem>>, vector<1x4x8x32xf32>
    %33 = vector.shape_cast %32 : vector<1x4x8x32xf32> to vector<4x8x32xf32>
    %c31_i32_17 = arith.constant 31 : i32
    %34 = tpu.dynamic_rotate %33 by %c31_i32_17 dim 2 : vector<4x8x32xf32>, i32 -> vector<4x8x32xf32>
    %c1_i32_18 = arith.constant 1 : i32
    %35 = tpu.dynamic_rotate %33 by %c1_i32_18 dim 2 : vector<4x8x32xf32>, i32 -> vector<4x8x32xf32>
    %cst_19 = arith.constant 0.000000e+00 : f32
    %36 = vector.broadcast %cst_19 : f32 to vector<4x8x32xf32>
    %37 = arith.subf %36, %34 : vector<4x8x32xf32>
    %38 = vector.shape_cast %12 : vector<1x1x32xi1> to vector<1x1x32xi1>
    %39 = vector.broadcast %38 : vector<1x1x32xi1> to vector<4x8x32xi1>
    %40 = arith.select %39, %37, %35 : vector<4x8x32xi1>, vector<4x8x32xf32>
    %41 = vector.shape_cast %6 : vector<8x32xf32> to vector<1x8x32xf32>
    %42 = vector.shape_cast %7 : vector<8x32xf32> to vector<1x8x32xf32>
    %43 = vector.broadcast %41 : vector<1x8x32xf32> to vector<4x8x32xf32>
    %44 = arith.mulf %33, %43 : vector<4x8x32xf32>
    %45 = vector.broadcast %42 : vector<1x8x32xf32> to vector<4x8x32xf32>
    %46 = arith.mulf %40, %45 : vector<4x8x32xf32>
    %47 = arith.addf %44, %46 : vector<4x8x32xf32>
    %c0_20 = arith.constant 0 : index
    %c0_21 = arith.constant 0 : index
    %c0_22 = arith.constant 0 : index
    %c0_23 = arith.constant 0 : index
    %48 = vector.load %arg7[%c0_20, %c0_21, %c0_22, %c0_23] : memref<1x4x8x32xf32, #tpu.memory_space<vmem>>, vector<1x4x8x32xf32>
    %49 = vector.shape_cast %48 : vector<1x4x8x32xf32> to vector<4x8x32xf32>
    %50 = vector.shape_cast %47 : vector<4x8x32xf32> to vector<1x4x8x32xf32>
    tpu.vector_store %arg7[%c0_20, %c0_21, %c0_22, %c0_23], %50 {strides = array<i32>} : memref<1x4x8x32xf32, #tpu.memory_space<vmem>>, vector<1x4x8x32xf32>,
    return
  }
  func.func @transform_0(%arg0: i32, %arg1: i32) -> (i32, i32, i32) {
    %c0_i32 = arith.constant 0 : i32
    %c0_i32_0 = arith.constant 0 : i32
    return %arg0, %arg1, %c0_i32 : i32, i32, i32
  }
  func.func @transform_1(%arg0: i32, %arg1: i32) -> (i32, i32) {
    %c0_i32 = arith.constant 0 : i32
    %c0_i32_0 = arith.constant 0 : i32
    %c0_i32_1 = arith.constant 0 : i32
    return %c0_i32, %c0_i32_0 : i32, i32
  }
  func.func @transform_2(%arg0: i32, %arg1: i32) -> (i32, i32, i32, i32) {
    %c0_i32 = arith.constant 0 : i32
    %c0_i32_0 = arith.constant 0 : i32
    %c0_i32_1 = arith.constant 0 : i32
    return %arg0, %c0_i32, %arg1, %c0_i32_0 : i32, i32, i32, i32
  }
  func.func @transform_3(%arg0: i32, %arg1: i32) -> (i32, i32, i32, i32) {
    %c0_i32 = arith.constant 0 : i32
    %c0_i32_0 = arith.constant 0 : i32
    %c0_i32_1 = arith.constant 0 : i32
    return %arg0, %c0_i32, %arg1, %c0_i32_0 : i32, i32, i32, i32
  }
  func.func @transform_4(%arg0: i32, %arg1: i32) -> (i32, i32, i32, i32) {
    %c0_i32 = arith.constant 0 : i32
    %c0_i32_0 = arith.constant 0 : i32
    %c0_i32_1 = arith.constant 0 : i32
    return %arg0, %c0_i32, %arg1, %c0_i32_0 : i32, i32, i32, i32
  }
  func.func @transform_5(%arg0: i32, %arg1: i32) -> (i32, i32, i32, i32) {
    %c0_i32 = arith.constant 0 : i32
    %c0_i32_0 = arith.constant 0 : i32
    %c0_i32_1 = arith.constant 0 : i32
    return %arg0, %c0_i32, %arg1, %c0_i32_0 : i32, i32, i32, i32
  }
}

</mosaic_0001>

<bundles_post_ra>
// kernel: tpu_custom_call.1
= control target key start
LH: loop header
LB: loop body
LE: loop exit
PB: predicated region body
PF: predicated region fallthrough
CT: control target
= control target key end

     0   :  { %s1782_s0 = inlined_call_operand.vmem [shape: f32[2,8,1], index: 0, kind: input, shape index: {}]   ;;  %s1783_s1 = inlined_call_operand.vmem [shape: f32[1,32], index: 1, kind: input, shape index: {}]   ;;  %s1784_s2 = inlined_call_operand.hbm [shape: f32[2,4,8,32], index: 2, kind: input, shape index: {}]   ;;  %s1785_s3 = inlined_call_operand.hbm [shape: f32[2,4,8,32], index: 3, kind: input, shape index: {}]   ;;  %s1786_s4 = inlined_call_operand.hbm [shape: f32[2,4,8,32], index: 4, kind: output, shape index: {0}]   ;;  %s1787_s5 = inlined_call_operand.hbm [shape: f32[2,4,8,32], index: 5, kind: output, shape index: {1}]  }
   0x1   :  { %1791 = sst [smem:[#allocation14_spill]] %s1784_s2 }
   0x2   :  { %11 = vsyncpa [#allocation3], 0 }
   0x3   :  { %13 = vsyncpa [#allocation3 + $0x1], 0 }
   0x4   :  { %14 = vsyncpa [#allocation6], 0 }
   0x5   :  { %16 = vsyncpa [#allocation6 + $0x1], 0 }
   0x6   :  { %17 = vsyncpa [#allocation4], 0 }
   0x7   :  { %19 = vsyncpa [#allocation4 + $0x1], 0 }
   0x8   :  { %20 = vsyncpa [#allocation9], 0 }
   0x9   :  { %22 = vsyncpa [#allocation9 + $0x1], 0  ;;  %s1297_s18 = smov 0   ;;  %s1299_s19 = smov 0  }
   0xa   :  { %s1301_s20 = smov 0   ;;  %s1303_s21 = smov 0  }
   0xb   :  { %s1305_s22 = smov 0   ;;  %s1307_s23 = smov 0  }
   0xc LB: > { %s937_s24 = sadd.s32 4294967295, %s1247_s23   ;;  %s938_s25 = sadd.s32 4294967294, %s1247_s23   ;;  %s1247_s23 = sphi %s1307_s23, %s28_s23   ;;  %s1243_s22 = sphi %s1305_s22, %s1811_s22   ;;  %s1239_s21 = sphi %s1303_s21, %s1810_s21   ;;  %s1235_s20 = sphi %s1301_s20, %s1809_s20   ;;  %s1231_s19 = sphi %s1299_s19, %s1808_s19   ;;  %s1227_s18 = sphi %s1297_s18, %s1807_s18  }
   0xd   : > { %s40_s26 = sadd.s32 1, %s1243_s22  ;;  %s98_s27 = sadd.s32 1, %s1235_s20 }
   0xe   : > { %p42_p0 = scmp.ge.s32.totalorder %s40_s26, 2  ;;  %p105_p1 = scmp.ne.s32.totalorder %s1235_s20, %s1231_s19 }
   0xf   : > { %p106_p2 = scmp.eq.s32.totalorder %s1247_s23, 0  ;;  %p111_p3 = scmp.ne.s32.totalorder %s1231_s19, %s1227_s18 }
  0x10   : > { %s1813_s26 = smov (%p42_p0, %s40_s26), 0  ;;  %p112_p5 = scmp.eq.s32.totalorder %s937_s24, 0 }
  0x11   : > { %p1338_p4 = por %p106_p2, %p105_p1  ;;  %s93_s29 = ssub.s32 %s1243_s22, %s1813_s26 }
  0x12   : > { %p165_p6 = scmp.eq.s32.totalorder %s937_s24, 1  ;;  %p96_p7 = scmp.eq.s32.totalorder %s93_s29, 0 }
  0x13   : > { %p1344_p8 = por %p112_p5, %p111_p3  ;;  %p171_p10 = scmp.eq.s32.totalorder %s938_s25, 1 }
  0x14   : > { %p1348_p9 = por %p165_p6, %p105_p1  ;;  %p1000_p13 = scmp.lt.s32.totalorder %s1247_s23, 2 }
  0x15   : > { %s1793_s30 = scalar_select %p1344_p8, 1, 0 }
  0x16   : > { %s1794_s6 = scalar_select %p1348_p9, 1, 0 }
  0x17   : > { %s1353_s7 = scalar_select %p96_p7, %s1235_s20, %s98_s27  }
  0x18   : > { %p1355_p11 = por %p171_p10, %p111_p3  ;;  %s1362_s9 = sand.u32 1, %s1235_s20  }
  0x19   : > { %s941_s10 = sshll.u32 %s1362_s9, 5  ;;  %s970_s11 = sshll.u32 %s1243_s22, 9 }
  0x1a   : > { %s1795_s8 = scalar_select %p1355_p11, 1, 0 }
  0x1b   : > { %s1796_s2 = sld [smem:[#allocation14_spill]]  ;;  %s236_s15 = scalar_lea.vmem [#allocation2], %s941_s10 }
  0x1c   : > { %s244_s16 = sshll.u32 %s236_s15, 4  ;;  %p1379_p0 = pnand %p1000_p13, %p1338_p4  ;;  %s1375_s16 = int_to_ptr.vmem [resolvable:$true] %s244_s16 }
  0x1d   : > { %s233_s24 = scalar_lea.sflag [#allocation3], %s1362_s9 }
  0x1e   : > { %p1071_p3 = pneg %p1379_p0 }
  0x21   : > { %s1371_s14 = scalar_lea.hbm %s1796_s2, %s970_s11  ;;  %s1074_s28 = scalar_lea.hbm %s1796_s2, 1024 }
  0x22   : > { %s1069_s25 = scalar_lea.hbm %s1371_s14, 512  ;;  %p1075_p4 = scmp.lt.u32.totalorder %s1371_s14, %s1796_s2 }
  0x23   : > { %p1070_p2 = scmp.ne.s32.totalorder %s1371_s14, %s1069_s25  ;;  %p1076_p7 = scmp.lt.u32.totalorder %s1074_s28, %s1069_s25 }
  0x24   : > { %p1078_p13 = scmp.lt.u32.totalorder %s1069_s25, %s1371_s14 }
  0x25   : > { %p1072_p5 = pnand %p1071_p3, %p1070_p2  ;;  %p1077_p10 = por %p1076_p7, %p1075_p4 }
  0x27   : > { %p1073_p6 = pneg %p1072_p5  ;;  %p1079_p12 = por %p1078_p13, %p1077_p10 }
  0x29   : > { %p1080_p1 = pnand %p1079_p12, %p1073_p6 }
  0x2b   : > { %1083 = shalt.err (!%p1080_p1)
}
  0x2c   : > { %s1084_s15 = scalar_lea.vmem %s1375_s16, 512  ;;  %s1249_s27 = smov [#allocation2]  }
  0x2d   : > { %p1085_p2 = scmp.ne.s32.totalorder %s1375_s16, %s1084_s15  ;;  %s1089_s29 = sshll.u32 %s1249_s27, 4  ;;  %s1090_s29 = int_to_ptr.vmem [resolvable:$false] %s1089_s29 }
  0x2e   : > { %s1091_s12 = scalar_lea.vmem %s1090_s29, 1024  ;;  %p1092_p9 = scmp.lt.s32.totalorder %s1375_s16, %s1090_s29 }
  0x2f   : > { %p1087_p5 = pnand %p1085_p2, %p1071_p3  ;;  %p1093_p4 = scmp.lt.s32.totalorder %s1091_s12, %s1084_s15 }
  0x31   : > { %p1088_p11 = pneg %p1087_p5  ;;  %p1094_p7 = por %p1093_p4, %p1092_p9 }
  0x33   : > { %p1095_p10 = pnand %p1094_p7, %p1088_p11 }
  0x35   : > { %1098 = shalt.err (!%p1095_p10)
}
  0x36   : > { %s1789_s25 = smov 128   ;;  %s1251_s28 = smov 8  }
  0x37   : > { %989 = dma.hbm_to_vmem [thread:$0]  (!%p1379_p0), %s1371_s14, 512, %s1375_s16, %s233_s24, %s1789_s25, %s1789_s25, %s1251_s28  }
  0x38   : > { %p274_p9 = scmp.lt.s32.totalorder %s1247_s23, 3  ;;  %s1421_s27 = scalar_lea.hbm %s1785_s3, %s970_s11 }
  0x39   : > { %p1798_p11 = scmp.ge.s32.totalorder %s1247_s23, 1  ;;  %s258_s12 = scalar_lea.vmem [#allocation5], %s941_s10 }
  0x3a   : > { %s266_s2 = sshll.u32 %s258_s12, 4  ;;  %s255_s14 = scalar_lea.sflag [#allocation6], %s1362_s9  ;;  %s1431_s2 = int_to_ptr.vmem [resolvable:$true] %s266_s2 }
  0x3b   : > { %p1425_p12 = pnand %p1798_p11, %p274_p9  ;;  %s1099_s16 = scalar_lea.hbm %s1421_s27, 512 }
  0x3c   : > { %p1100_p1 = scmp.ne.s32.totalorder %s1421_s27, %s1099_s16  ;;  %s1104_s13 = scalar_lea.hbm %s1785_s3, 1024 }
  0x3d   : > { %p1105_p2 = scmp.lt.u32.totalorder %s1421_s27, %s1785_s3  ;;  %p1106_p5 = scmp.lt.u32.totalorder %s1104_s13, %s1099_s16 }
  0x3e   : > { %p1102_p6 = pnand %p1100_p1, %p1071_p3  ;;  %p1108_p7 = scmp.lt.u32.totalorder %s1099_s16, %s1421_s27 }
  0x3f   : > { %p1107_p4 = por %p1106_p5, %p1105_p2 }
  0x40   : > { %p1103_p13 = pneg %p1102_p6 }
  0x41   : > { %p1109_p10 = por %p1108_p7, %p1107_p4 }
  0x43   : > { %p1110_p9 = pnand %p1109_p10, %p1103_p13 }
  0x45   : > { %1113 = shalt.err (!%p1110_p9)
}
  0x46   : > { %s1114_s10 = scalar_lea.vmem %s1431_s2, 512  ;;  %s1252_s12 = smov [#allocation5]  }
  0x47   : > { %p1115_p11 = scmp.ne.s32.totalorder %s1431_s2, %s1114_s10  ;;  %s1119_s11 = sshll.u32 %s1252_s12, 4  ;;  %s1120_s11 = int_to_ptr.vmem [resolvable:$false] %s1119_s11 }
  0x48   : > { %s1121_s25 = scalar_lea.vmem %s1120_s11, 1024  ;;  %p1122_p8 = scmp.lt.s32.totalorder %s1431_s2, %s1120_s11 }
  0x49   : > { %p1117_p1 = pnand %p1115_p11, %p1071_p3  ;;  %p1123_p2 = scmp.lt.s32.totalorder %s1121_s25, %s1114_s10 }
  0x4b   : > { %p1118_p6 = pneg %p1117_p1  ;;  %p1124_p5 = por %p1123_p2, %p1122_p8 }
  0x4d   : > { %p1125_p4 = pnand %p1124_p5, %p1118_p6 }
  0x4f   : > { %1128 = shalt.err (!%p1125_p4)
}
  0x50   : > { %s1800_s16 = smov 128   ;;  %278 = sbr.rel (%p1425_p12) target bundleno = 503 (0x1f7), region = 36 }
  0x51   : > { %992 = dma.hbm_to_vmem [thread:$0]  (!%p1379_p0), %s1421_s27, 512, %s1431_s2, %s255_s14, %s1800_s16, %s1800_s16, %s1251_s28  }
  0x52   : > { %s1465_s24 = sand.u32 (!%p1425_p12), 1, %s1231_s19   ;;  %p1801_p8 = scmp.ne.s32.totalorder (!%p1425_p12), %s1793_s30, 0 }
  0x53   : > { %s1468_s13 = sshll.u32 (!%p1425_p12), %s1465_s24, 5  ;;  %s281_s17 = scalar_lea.sflag (!%p1425_p12), [#allocation3], %s1465_s24 }
  0x54   : > { %s284_s15 = scalar_lea.vmem (!%p1425_p12), [#allocation2], %s1468_s13 }
  0x57   : > { %1210 = dma.done.wait (%p1801_p8), %s281_s17, 512  }
  0x58   : > { %1212 = vsyncadd (%p1801_p8), %s281_s17, 4294966784  ;;  %s290_s2 = scalar_lea.sflag [#allocation6], %s1465_s24  ;;  %s293_s9 = scalar_lea.vmem [#allocation5], %s1468_s13 }
  0x59   : > { %1214 = dma.done.wait (%p1801_p8), %s290_s2, 512  }
  0x5a   : > { %1216 = vsyncadd (%p1801_p8), %s290_s2, 4294966784  ;;  %v1253_v0 = vmov 0   ;;  %v1482_v1 = vld [vmem:[%s284_s15] sm:$0xff]  ;;  %v1484_v2 = vld [vmem:[%s284_s15 + $0x10] sm:$0xff]  ;;  %p337_p0 = scmp.lt.s32.totalorder %s1239_s21, 1  ;;  %s1254_s28 = smov 32  }
  0x5b   : > { %1064 = vset.pattern.permute.xlu0 %v1253_v0  ;;  %580 = vrot.lane.b32.xlu1 %v1484_v2, %s1254_s28  ;;  %v1491_v3 = vld [vmem:[%s284_s15 + $0x8] sm:$0xff]  ;;  %v1493_v4 = vld [vmem:[%s284_s15 + $0x18] sm:$0xff]  ;;  %v1500_v5 = vld [vmem:[%s293_s9] sm:$0xff]  ;;  %vm573_vm0 = vcmask 1047808   ;;  %v1255_v36 = vmov 2102212464  }
  0x5c   : > { %574 = vrot.lane.b32.xlu0 %v1482_v1, %s1254_s28  ;;  %s338_s30 = scalar_select %p337_p0, %s1239_s21, 1  ;;  %v1502_v6 = vld [vmem:[%s293_s9 + $0x8] sm:$0xff]  ;;  %v1508_v7 = vld [vmem:[%s293_s9 + $0x10] sm:$0xff]  ;;  %v1510_v8 = vld [vmem:[%s293_s9 + $0x18] sm:$0xff]  ;;  %v1256_v38 = vmov 920167782  }
  0x5d   : > { %v953_v26 = vld [vmem:[%s1783_s1] ss:$0 sm:$0xff]  ;;  %v1257_v43 = vmov 1326507024   ;;  %v1258_v45 = vmov 683565275  }
  0x5e   : > { %s952_s27 = sshll.u32 %s338_s30, 3  ;;  %v1259_v47 = vmov 2475754826   ;;  %v1260_v50 = vmov 2131351028   ;;  %s1261_s25 = smov 97  }
  0x5f   : > { %583 = vrot.lane.b32.xlu1 %v1493_v4, %s1254_s28  ;;  %s343_s10 = scalar_lea.vmem %s1782_s0, %s952_s27  ;;  %s1262_s16 = smov 127  }
  0x60   : > { %577 = vrot.lane.b32.xlu0 %v1491_v3, %s1254_s28  ;;  %v344_v9 = vld [vmem:[%s343_s10] sm:$0xff]  ;;  %s329_s17 = scalar_lea.vmem [#allocation7], %s1468_s13  ;;  %s972_s15 = sshll.u32 %s1239_s21, 9 }
  0x61   : > { %s761_s2 = sshll.u32 %s329_s17, 4  ;;  %s1664_s30 = scalar_lea.hbm %s1786_s4, %s972_s15  ;;  %s1666_s2 = int_to_ptr.vmem [resolvable:$true] %s761_s2 }
  0x62   : > { %s1672_s27 = scalar_lea.vmem [#allocation8], %s1468_s13  ;;  %s742_s29 = scalar_lea.sflag [#allocation4], %s1465_s24 }
  0x63   : > { %664 = vrot.lane.b32.xlu1 %v1502_v6, %s1254_s28  ;;  %s1129_s14 = scalar_lea.vmem %s1666_s2, 512  ;;  %p1804_p12 = scmp.ne.s32.totalorder %s1794_s6, 0 }
  0x64   : > { %661 = vrot.lane.b32.xlu0 %v1500_v5, %s1254_s28  ;;  %p1130_p3 = scmp.ne.s32.totalorder %s1666_s2, %s1129_s14  ;;  %s1263_s10 = smov [#allocation7]  }
  0x65   : > { %s1133_s12 = sshll.u32 %s1263_s10, 4  ;;  %s1134_s12 = int_to_ptr.vmem [resolvable:$false] %s1133_s12 }
  0x66   : > { %p1131_p13 = pnand %p1130_p3, %p1804_p12  ;;  %s1135_s11 = scalar_lea.vmem %s1134_s12, 1024 }
  0x67   : > { %670 = vrot.lane.b32.xlu1 %v1510_v8, %s1254_s28  ;;  %p1136_p10 = scmp.lt.s32.totalorder %s1666_s2, %s1134_s12  ;;  %p1137_p9 = scmp.lt.s32.totalorder %s1135_s11, %s1129_s14 }
  0x68   : > { %667 = vrot.lane.b32.xlu0 %v1508_v7, %s1254_s28  ;;  %p1132_p7 = pneg %p1131_p13 }
  0x69   : > { %p1138_p11 = por %p1137_p9, %p1136_p10 }
  0x6b   : > { %p1139_p1 = pnand %p1138_p11, %p1132_p7 }
  0x6c   : > { %348 = vperm.xlu0 %1064, %v344_v9  }
  0xcd   : > { %v581_v11 = vpop.permute.xlu1 %580 }
  0xce   : > { %v575_v10 = vpop.permute.xlu0 %574  ;;  %v582_v13 = vsel %vm573_vm0, %v581_v11, %v1484_v2 }
  0xcf   : > { %v576_v12 = vsel %vm573_vm0, %v575_v10, %v1482_v1  ;;  %590 = vrot.lane.b32.xlu0 %v582_v13, %s1254_s28 }
  0xd0   : > { %586 = vrot.lane.b32.xlu1 %v576_v12, %s1254_s28 }
  0xd1   : > { %v584_v15 = vpop.permute.xlu1 %583 }
  0xd2   : > { %v578_v14 = vpop.permute.xlu0 %577  ;;  %v585_v17 = vsel %vm573_vm0, %v584_v15, %v1493_v4 }
  0xd3   : > { %v579_v16 = vsel %vm573_vm0, %v578_v14, %v1491_v3 }
  0xd4   : > { %588 = vrot.lane.b32.xlu1 %v579_v16, %s1254_s28 }
  0xd5   : > { %v665_v19 = vpop.permute.xlu1 %664 }
  0xd6   : > { %v662_v18 = vpop.permute.xlu0 %661  ;;  %v666_v21 = vsel %vm573_vm0, %v665_v19, %v1502_v6 }
  0xd7   : > { %v663_v20 = vsel %vm573_vm0, %v662_v18, %v1500_v5 }
  0xd8   : > { %592 = vrot.lane.b32.xlu1 %v585_v17, %s1254_s28  ;;  %673 = vrot.lane.b32.xlu0 %v663_v20, %s1254_s28 }
  0xd9   : > { %v671_v23 = vpop.permute.xlu1 %670 }
  0xda   : > { %v668_v22 = vpop.permute.xlu0 %667  ;;  %v672_v25 = vsel %vm573_vm0, %v671_v23, %v1510_v8 }
  0xdb   : > { %v669_v24 = vsel %vm573_vm0, %v668_v22, %v1508_v7 }
  0xdc   : > { %675 = vrot.lane.b32.xlu1 %v666_v21, %s1254_s28  ;;  %677 = vrot.lane.b32.xlu0 %v669_v24, %s1254_s28 }
  0xe0   : > { %679 = vrot.lane.b32.xlu1 %v672_v25, %s1254_s28 }
  0xeb   : > { %v349_v27 = vpop.permute.xlu0 %348 }
  0xec   : > { %v1546_v28 = vmul.f32 %v953_v26, %v349_v27 }
  0xee   : > { %v361_v29 = vand.u32 2139095040, %v1546_v28  ;;  %v358_v40 = vand.u32 2147483647, %v1546_v28  ;;  %vm360_vm8 = vcmp.lt.s32.totalorder %v1546_v28, 0 }
  0xf0   : > { %v362_v30 = vshrl.u32 %v361_v29, 23  ;;  %v365_v55 = vand.u32 8388607, %v358_v40  ;;  %vm359_vm9 = vcmp.le.f32.partialorder %v358_v40, 0.7853982 }
  0xf2   : > { %v954_v31 = vadd.s32 4294967169, %v362_v30  ;;  %v366_v9 = vor.u32 8388608, %v365_v55 }
  0xf4   : > { %v368_v32 = vadd.s32 1, %v954_v31  ;;  %v406_v17 = vshll.u32 %v366_v9, 8 }
  0xf6   : > { %vm369_vm1 = vcmp.gt.s32.totalorder %v368_v32, 0 }
  0xf7   : > { %v370_v33 = vsel %vm369_vm1, %v368_v32, 0 }
  0xf8   : > { %v372_v34 = vand.u32 31, %v370_v33  ;;  %v1550_v41 = vshrl.u32 %v370_v33, 5 }
  0xfa   : > { %v373_v35 = vsub.s32 32, %v372_v34  ;;  %v384_v37 = vshll.u32 %v1255_v36, %v372_v34  ;;  %v387_v42 = vshll.u32 %v1256_v38, %v372_v34  ;;  %v375_v46 = vshll.u32 %v1258_v45, %v372_v34 }
  0xfb   : > { %v378_v48 = vshll.u32 %v1259_v47, %v372_v34  ;;  %v381_v52 = vshll.u32 %v1260_v50, %v372_v34  ;;  %vm393_vm2 = vcmp.lt.s32.totalorder %v1550_v41, 4  ;;  %vm390_vm3 = vcmp.lt.s32.totalorder %v1550_v41, 1 }
  0xfc   : > { %v385_v39 = vshrl.u32 %v1256_v38, %v373_v35  ;;  %v388_v44 = vshrl.u32 %v1257_v43, %v373_v35  ;;  %v376_v49 = vshrl.u32 %v1259_v47, %v373_v35  ;;  %v379_v51 = vshrl.u32 %v1260_v50, %v373_v35 }
  0xfd   : > { %v382_v53 = vshrl.u32 %v1255_v36, %v373_v35  ;;  %vm392_vm4 = vcmp.lt.s32.totalorder %v1550_v41, 3  ;;  %vm391_vm5 = vcmp.lt.s32.totalorder %v1550_v41, 2  ;;  %v374_v29 = vshrl.u32 %v1258_v45, %v373_v35 }
  0xfe   : > { %v386_v54 = vor.u32 %v385_v39, %v384_v37  ;;  %v389_v56 = vor.u32 %v388_v44, %v387_v42  ;;  %v377_v60 = vor.u32 %v376_v49, %v375_v46  ;;  %v380_v61 = vor.u32 %v379_v51, %v378_v48 }
  0xff   : > { %v383_v62 = vor.u32 %v382_v53, %v381_v52 }
 0x100   : > { %v399_v63 = vsel %vm393_vm2, %v386_v54, 920167782  ;;  %v403_v10 = vsel %vm393_vm2, %v389_v56, 1326507024  ;;  %v398_v13 = vsel %vm390_vm3, %v377_v60, %v380_v61  ;;  %v394_v38 = vsel %vm390_vm3, %v374_v29, %v377_v60 }
 0x101   : > { %v400_v14 = vsel %vm392_vm4, %v383_v62, %v399_v63  ;;  %v402_v15 = vsel %vm390_vm3, %v380_v61, %v383_v62  ;;  %v404_v16 = vsel %vm392_vm4, %v386_v54, %v403_v10  ;;  %v395_v33 = vsel %vm393_vm2, %v383_v62, 2102212464 }
 0x102   : > { %v401_v20 = vsel %vm391_vm5, %v398_v13, %v400_v14  ;;  %v405_v23 = vsel %vm391_vm5, %v402_v15, %v404_v16  ;;  %v396_v35 = vsel %vm392_vm4, %v380_v61, %v395_v33  ;;  %v565_v29 = vlaneseq }
 0x103   : > { %v1589_v24 = vmul.u32.u64.low %v406_v17, %v401_v20  ;;  %v1590_v25 = vmul.u32.u64.high %v406_v17, %v401_v20, %v1589_v24  ;;  %v1592_v30 = vmul.u32.u64.low %v406_v17, %v405_v23  ;;  %v1593_v31 = vmul.u32.u64.high %v406_v17, %v405_v23, %v1592_v30 }
 0x104   : > { %v397_v42 = vsel %vm391_vm5, %v394_v38, %v396_v35  ;;  %v566_v40 = vand.u32 127, %v565_v29  ;;  %vm652_vm2 = vcmask 261120  }
 0x105   : > { %v416_v43 = vadd.s32 1, %v1590_v25  ;;  %vm415_vm6 = vc.u32 %v1593_v31, %v1589_v24  ;;  %v413_v48 = vmul.u32 %v406_v17, %v397_v42  ;;  %v414_v63 = vadd.s32 %v1589_v24, %v1593_v31 }
 0x106   : > { %v567_v35 = vand.u32 1, %v566_v40 }
 0x107   : > { %v417_v50 = vsel %vm415_vm6, %v416_v43, %v1590_v25 }
 0x108   : > { %v418_v52 = vadd.s32 %v417_v50, %v413_v48  ;;  %vm1621_vm1 = vcmp.eq.s32.totalorder %v567_v35, 0 }
 0x10a   : > { %v419_v53 = vadd.s32 536870912, %v418_v52 }
 0x10c   : > { %v420_v54 = vshrl.u32 %v419_v53, 30 }
 0x10e   : > { %v421_v55 = vshll.u32 %v420_v54, 30 }
 0x110   : > { %v422_v56 = vsub.s32 %v418_v52, %v421_v55 }
 0x141   : > { %v591_v58 = vpop.permute.xlu0 %590 }
 0x142   : > { %v587_v57 = vpop.permute.xlu1 %586  ;;  %v596_v0 = vsel %vm573_vm0, %v591_v58, %v1484_v2 }
 0x143   : > { %v594_v59 = vsel %vm573_vm0, %v587_v57, %v1482_v1  ;;  %v600_v36 = vsub.f32 0.0, %v596_v0  ;;  %v424_v57 = vsub.s32 0, %v422_v56 }
 0x144   : > { %624 = vrot.lane.b32.xlu0 %v594_v59, %s1261_s25  ;;  %v598_v26 = vsub.f32 0.0, %v594_v59 }
 0x145   : > { %v955_v58 = vmin.u32 %v424_v57, %v422_v56 }
 0x146   : > { %v589_v11 = vpop.permute.xlu1 %588 }
 0x147   : > { %v595_v12 = vsel %vm573_vm0, %v589_v11, %v1491_v3  ;;  %v426_v59 = vclz %v955_v58 }
 0x148   : > { %626 = vrot.lane.b32.xlu1 %v595_v12, %s1261_s25  ;;  %628 = vrot.lane.b32.xlu0 %v596_v0, %s1261_s25  ;;  %v599_v34 = vsub.f32 0.0, %v595_v12 }
 0x149   : > { %v956_v60 = vadd.s32 4294967294, %v426_v59 }
 0x14a   : > { %v593_v18 = vpop.permute.xlu1 %592  ;;  %v674_v19 = vpop.permute.xlu0 %673 }
 0x14b   : > { %v597_v21 = vsel %vm573_vm0, %v593_v18, %v1493_v4  ;;  %v681_v22 = vsel %vm573_vm0, %v674_v19, %v1500_v5  ;;  %vm957_vm7 = vcmp.lt.s32.totalorder %v956_v60, 0 }
 0x14c   : > { %630 = vrot.lane.b32.xlu1 %v597_v21, %s1261_s25  ;;  %709 = vrot.lane.b32.xlu0 %v681_v22, %s1261_s25  ;;  %v601_v44 = vsub.f32 0.0, %v597_v21  ;;  %v685_v45 = vsub.f32 0.0, %v681_v22  ;;  %v429_v61 = vsel %vm957_vm7, 0, %v956_v60  ;;  %v444_v21 = vsub.s32 4, %v420_v54 }
 0x14d   : > { %v434_v62 = vsub.s32 4294967266, %v429_v61  ;;  %v430_v0 = vsub.s32 32, %v429_v61  ;;  %v431_v10 = vshll.u32 %v422_v56, %v429_v61 }
 0x14e   : > { %v676_v27 = vpop.permute.xlu1 %675  ;;  %v678_v37 = vpop.permute.xlu0 %677  ;;  %v445_v22 = vsel %vm360_vm8, %v444_v21, %v420_v54 }
 0x14f   : > { %v682_v32 = vsel %vm573_vm0, %v676_v27, %v1502_v6  ;;  %v683_v39 = vsel %vm573_vm0, %v678_v37, %v1508_v7  ;;  %v435_v9 = vadd.s32 127, %v434_v62  ;;  %v432_v11 = vshrl.u32 %v414_v63, %v430_v0 }
 0x150   : > { %711 = vrot.lane.b32.xlu1 %v682_v32, %s1261_s25  ;;  %608 = vrot.lane.b32.xlu0 %v598_v26, %s1262_s16  ;;  %v687_v47 = vsub.f32 0.0, %v683_v39  ;;  %v686_v51 = vsub.f32 0.0, %v682_v32  ;;  %v447_v23 = vsel %vm359_vm9, 0, %v445_v22 }
 0x151   : > { %v436_v12 = vshll.u32 %v435_v9, 23  ;;  %v433_v13 = vor.u32 %v432_v11, %v431_v10  ;;  %v554_v24 = vadd.s32 3, %v447_v23  ;;  %v451_v27 = vand.u32 3, %v447_v23 }
 0x152   : > { %v680_v46 = vpop.permute.xlu1 %679 }
 0x153   : > { %v684_v49 = vsel %vm573_vm0, %v680_v46, %v1510_v8  ;;  %v437_v14 = vor.u32 4788187, %v436_v12  ;;  %v440_v16 = vcvt.s32.f32 %v433_v13  ;;  %v555_v30 = vand.u32 3, %v554_v24 }
 0x154   : > { %610 = vrot.lane.b32.xlu1 %v599_v34, %s1262_s16  ;;  %612 = vrot.lane.b32.xlu0 %v600_v36, %s1262_s16  ;;  %v688_v41 = vsub.f32 0.0, %v684_v49  ;;  %vm453_vm10 = vcmp.eq.s32.totalorder %v451_v27, 0  ;;  %vm456_vm11 = vcmp.eq.s32.totalorder %v451_v27, 2  ;;  %vm452_vm14 = vcmp.lt.s32.totalorder %v451_v27, 2 }
 0x155   : > { %v438_v15 = vand.u32 2147483647, %v437_v14  ;;  %vm557_vm12 = vcmp.eq.s32.totalorder %v555_v30, 0  ;;  %vm560_vm13 = vcmp.eq.s32.totalorder %v555_v30, 2  ;;  %vm556_vm15 = vcmp.lt.s32.totalorder %v555_v30, 2 }
 0x156   : > { %vm450_vm0 = vweird.f32 %v1546_v28 }
 0x157   : > { %v441_v17 = vmul.f32 %v440_v16, %v438_v15 }
 0x158   : > { %614 = vrot.lane.b32.xlu1 %v601_v44, %s1262_s16  ;;  %693 = vrot.lane.b32.xlu0 %v685_v45, %s1262_s16 }
 0x159   : > { %v442_v18 = vxor.u32 2147483648, %v441_v17 }
 0x15b   : > { %v443_v19 = vsel %vm360_vm8, %v442_v18, %v441_v17 }
 0x15c   : > { %695 = vrot.lane.b32.xlu1 %v686_v51, %s1262_s16  ;;  %697 = vrot.lane.b32.xlu0 %v687_v47, %s1262_s16  ;;  %v446_v20 = vsel %vm359_vm9, %v1546_v28, %v443_v19 }
 0x15d   : > { %1065 = vcosq.f32 %v446_v20 }
 0x15e   : > { %1067 = vsinq.f32 %v446_v20 }
 0x160   : > { %699 = vrot.lane.b32.xlu1 %v688_v41, %s1262_s16  ;;  %713 = vrot.lane.b32.xlu0 %v683_v39, %s1261_s25 }
 0x164   : > { %715 = vrot.lane.b32.xlu1 %v684_v49, %s1261_s25 }
 0x167   : > { %v1066_v25 = vpop.eup %1065 }
 0x168   : > { %v1068_v26 = vpop.eup %1067  ;;  %v457_v33 = vxor.u32 2147483648, %v1066_v25 }
 0x169   : > { %v454_v32 = vxor.u32 2147483648, %v1068_v26 }
 0x16a   : > { %v458_v38 = vsel %vm456_vm11, %v457_v33, %v1068_v26  ;;  %v562_v42 = vsel %vm560_vm13, %v457_v33, %v1068_v26 }
 0x16b   : > { %v455_v37 = vsel %vm453_vm10, %v1066_v25, %v454_v32  ;;  %v559_v39 = vsel %vm557_vm12, %v1066_v25, %v454_v32 }
 0x16c   : > { %v459_v43 = vsel %vm452_vm14, %v455_v37, %v458_v38  ;;  %v563_v46 = vsel %vm556_vm15, %v559_v39, %v562_v42 }
 0x16d   : > { %v1625_v48 = vsel %vm450_vm0, nan, %v459_v43  ;;  %v1627_v51 = vsel %vm450_vm0, nan, %v563_v46 }
 0x16e   : > { %v640_v28 = vmul.f32 %v1482_v1, %v1625_v48  ;;  %v641_v58 = vmul.f32 %v1491_v3, %v1625_v48  ;;  %v642_v59 = vmul.f32 %v1484_v2, %v1625_v48  ;;  %v643_v2 = vmul.f32 %v1493_v4, %v1625_v48 }
 0x16f   : > { %v725_v11 = vmul.f32 %v1500_v5, %v1625_v48  ;;  %v726_v16 = vmul.f32 %v1502_v6, %v1625_v48 }
 0x1b6   : > { %v625_v31 = vpop.permute.xlu0 %624 }
 0x1ba   : > { %v627_v34 = vpop.permute.xlu1 %626  ;;  %v629_v36 = vpop.permute.xlu0 %628 }
 0x1be   : > { %v631_v44 = vpop.permute.xlu1 %630  ;;  %v710_v45 = vpop.permute.xlu0 %709 }
 0x1c2   : > { %v712_v49 = vpop.permute.xlu1 %711  ;;  %v609_v50 = vpop.permute.xlu0 %608 }
 0x1c3   : > { %v636_v41 = vsel %vm1621_vm1, %v609_v50, %v625_v31 }
 0x1c4   : > { %v644_v52 = vmul.f32 %v636_v41, %v1627_v51 }
 0x1c6   : > { %v648_v53 = vadd.f32 %v644_v52, %v640_v28  ;;  %v611_v54 = vpop.permute.xlu1 %610  ;;  %v613_v55 = vpop.permute.xlu0 %612 }
 0x1c7   : > { %v637_v56 = vsel %vm1621_vm1, %v611_v54, %v627_v34  ;;  %v638_v57 = vsel %vm1621_vm1, %v613_v55, %v629_v36 }
 0x1c8   : > { %653 = vst.msk [vmem:[%s329_s17] sm:$0xff] %vm652_vm2, %v648_v53  ;;  %v645_v1 = vmul.f32 %v637_v56, %v1627_v51  ;;  %v646_v60 = vmul.f32 %v638_v57, %v1627_v51 }
 0x1ca   : > { %v649_v61 = vadd.f32 %v645_v1, %v641_v58  ;;  %v650_v62 = vadd.f32 %v646_v60, %v642_v59  ;;  %v615_v63 = vpop.permute.xlu1 %614  ;;  %v694_v0 = vpop.permute.xlu0 %693 }
 0x1cb   : > { %v639_v9 = vsel %vm1621_vm1, %v615_v63, %v631_v44  ;;  %v721_v3 = vsel %vm1621_vm1, %v694_v0, %v710_v45 }
 0x1cc   : > { %654 = vst.msk [vmem:[%s329_s17 + $0x8] sm:$0xff] %vm652_vm2, %v649_v61  ;;  %655 = vst.msk [vmem:[%s329_s17 + $0x10] sm:$0xff] %vm652_vm2, %v650_v62  ;;  %v647_v10 = vmul.f32 %v639_v9, %v1627_v51  ;;  %v729_v12 = vmul.f32 %v721_v3, %v1627_v51 }
 0x1ce   : > { %v651_v4 = vadd.f32 %v647_v10, %v643_v2  ;;  %v733_v13 = vadd.f32 %v729_v12, %v725_v11  ;;  %v696_v14 = vpop.permute.xlu1 %695  ;;  %v698_v15 = vpop.permute.xlu0 %697 }
 0x1cf   : > { %v722_v5 = vsel %vm1621_vm1, %v696_v14, %v712_v49 }
 0x1d0   : > { %656 = vst.msk [vmem:[%s329_s17 + $0x18] sm:$0xff] %vm652_vm2, %v651_v4  ;;  %737 = vst.msk [vmem:[%s1672_s27] sm:$0xff] %vm652_vm2, %v733_v13  ;;  %v730_v17 = vmul.f32 %v722_v5, %v1627_v51 }
 0x1d1   : > { %1142 = shalt.err (!%p1139_p1)
}
 0x1d2   : > { %s1143_s13 = scalar_lea.hbm %s1664_s30, 512  ;;  %s1147_s17 = scalar_lea.hbm %s1786_s4, 1024 }
 0x1d3   : > { %p1144_p6 = scmp.ne.s32.totalorder %s1664_s30, %s1143_s13  ;;  %p1148_p4 = scmp.lt.u32.totalorder %s1664_s30, %s1786_s4 }
 0x1d4   : > { %p1149_p8 = scmp.lt.u32.totalorder %s1147_s17, %s1143_s13  ;;  %p1151_p3 = scmp.lt.u32.totalorder %s1143_s13, %s1664_s30 }
 0x1d5   : > { %p1145_p2 = pnand %p1144_p6, %p1804_p12 }
 0x1d6   : > { %p1150_p0 = por %p1149_p8, %p1148_p4 }
 0x1d7   : > { %p1146_p5 = pneg %p1145_p2 }
 0x1d8   : > { %p1152_p13 = por %p1151_p3, %p1150_p0 }
 0x1da   : > { %p1153_p7 = pnand %p1152_p13, %p1146_p5 }
 0x1dc   : > { %1156 = shalt.err (!%p1153_p7)
}
 0x1dd   : > { %s1264_s14 = smov 128   ;;  %s1265_s10 = smov 8   ;;  %v734_v6 = vadd.f32 %v730_v17, %v726_v16  ;;  %v700_v18 = vpop.permute.xlu1 %699  ;;  %v714_v19 = vpop.permute.xlu0 %713  ;;  %v727_v21 = vmul.f32 %v1508_v7, %v1625_v48  ;;  %v728_v26 = vmul.f32 %v1510_v8, %v1625_v48 }
 0x1de   : > { %982 = dma.vmem_to_hbm [thread:$0]  (%p1804_p12), %s1666_s2, 512, %s1664_s30, %s742_s29, %s1264_s14, %s1264_s14, %s1265_s10   ;;  %v723_v20 = vsel %vm1621_vm1, %v698_v15, %v714_v19 }
 0x1df   : > { %738 = vst.msk [vmem:[%s1672_s27 + $0x8] sm:$0xff] %vm652_vm2, %v734_v6  ;;  %v731_v22 = vmul.f32 %v723_v20, %v1627_v51  ;;  %s778_s2 = sshll.u32 %s1672_s27, 4  ;;  %s1726_s12 = scalar_lea.hbm %s1787_s5, %s972_s15  ;;  %s1728_s2 = int_to_ptr.vmem [resolvable:$true] %s778_s2 }
 0x1e0   : > { %s747_s11 = scalar_lea.sflag [#allocation9], %s1465_s24  ;;  %s1157_s13 = scalar_lea.vmem %s1728_s2, 512 }
 0x1e1   : > { %v735_v23 = vadd.f32 %v731_v22, %v727_v21  ;;  %v716_v24 = vpop.permute.xlu1 %715  ;;  %p1158_p10 = scmp.ne.s32.totalorder %s1728_s2, %s1157_s13  ;;  %s1266_s25 = smov [#allocation8]  }
 0x1e2   : > { %v724_v25 = vsel %vm1621_vm1, %v700_v18, %v716_v24  ;;  %s1161_s21 = sshll.u32 %s1266_s25, 4  ;;  %s1162_s21 = int_to_ptr.vmem [resolvable:$false] %s1161_s21 }
 0x1e3   : > { %739 = vst.msk [vmem:[%s1672_s27 + $0x10] sm:$0xff] %vm652_vm2, %v735_v23  ;;  %v732_v27 = vmul.f32 %v724_v25, %v1627_v51  ;;  %p1159_p9 = pnand %p1158_p10, %p1804_p12  ;;  %s1163_s16 = scalar_lea.vmem %s1162_s21, 1024 }
 0x1e4   : > { %p1164_p1 = scmp.lt.s32.totalorder %s1728_s2, %s1162_s21  ;;  %p1165_p6 = scmp.lt.s32.totalorder %s1163_s16, %s1157_s13 }
 0x1e5   : > { %v736_v29 = vadd.f32 %v732_v27, %v728_v26  ;;  %p1160_p11 = pneg %p1159_p9 }
 0x1e6   : > { %p1166_p2 = por %p1165_p6, %p1164_p1 }
 0x1e7   : > { %740 = vst.msk [vmem:[%s1672_s27 + $0x18] sm:$0xff] %vm652_vm2, %v736_v29 }
 0x1e8   : > { %p1167_p5 = pnand %p1166_p2, %p1160_p11 }
 0x1ea   : > { %1170 = shalt.err (!%p1167_p5)
}
 0x1eb   : > { %s1171_s15 = scalar_lea.hbm %s1726_s12, 512  ;;  %s1175_s9 = scalar_lea.hbm %s1787_s5, 1024 }
 0x1ec   : > { %p1172_p4 = scmp.ne.s32.totalorder %s1726_s12, %s1171_s15  ;;  %p1176_p3 = scmp.lt.u32.totalorder %s1726_s12, %s1787_s5 }
 0x1ed   : > { %p1177_p13 = scmp.lt.u32.totalorder %s1175_s9, %s1171_s15  ;;  %p1179_p10 = scmp.lt.u32.totalorder %s1171_s15, %s1726_s12 }
 0x1ee   : > { %p1173_p8 = pnand %p1172_p4, %p1804_p12 }
 0x1ef   : > { %p1178_p7 = por %p1177_p13, %p1176_p3 }
 0x1f0   : > { %p1174_p0 = pneg %p1173_p8 }
 0x1f1   : > { %p1180_p9 = por %p1179_p10, %p1178_p7 }
 0x1f3   : > { %p1181_p11 = pnand %p1180_p9, %p1174_p0 }
 0x1f5   : > { %1184 = shalt.err (!%p1181_p11)
}
 0x1f6   : > { %983 = dma.vmem_to_hbm [thread:$0]  (%p1804_p12), %s1728_s2, 512, %s1726_s12, %s747_s11, %s1264_s14, %s1264_s14, %s1265_s10  }
 0x1f7 PF: > { %s793_s29 = sand.u32 1, %s1227_s18   ;;  %p1805_p1 = scmp.ne.s32.totalorder %s1795_s8, 0 }
 0x1f8   : > { %p1806_p6 = scmp.ge.s32.totalorder %s1247_s23, 2  ;;  %s794_s13 = scalar_lea.sflag [#allocation4], %s793_s29 }
 0x1fa   : > { %p994_p2 = pnand %p1806_p6, %p1805_p1 }
 0x1fc   : > { %1218 = dma.done.wait (!%p994_p2), %s794_s13, 512  }
 0x1fd   : > { %1220 = vsyncadd (!%p994_p2), %s794_s13, 4294966784  ;;  %s803_s6 = scalar_lea.sflag [#allocation9], %s793_s29 }
 0x1fe   : > { %1222 = dma.done.wait (!%p994_p2), %s803_s6, 512  }
 0x1ff   : > { %1224 = vsyncadd (!%p994_p2), %s803_s6, 4294966784  ;;  %s28_s23 = sadd.s32 1, %s1247_s23   ;;  %s1807_s18 = smov %s1231_s19 }
 0x200   : > { %p25_p5 = scmp.ge.s32.totalorder %s28_s23, 4   ;;  %s1808_s19 = smov %s1235_s20 }
 0x201   : > { %s1809_s20 = smov %s1353_s7  ;;  %s1810_s21 = smov %s1243_s22 }
 0x202   : > { %s1811_s22 = smov %s1813_s26  ;;  %27 = sbr.rel (!%p25_p5) target bundleno = 12 (0xc), region = 114 }
 0x209   :  { %808 = vsyncpa [#allocation3], 1 }
 0x20a   :  { %810 = vsyncpa [#allocation3 + $0x1], 1 }
 0x20b   :  { %811 = vsyncpa [#allocation6], 1 }
 0x20c   :  { %813 = vsyncpa [#allocation6 + $0x1], 1 }
 0x20d   :  { %814 = vsyncpa [#allocation4], 1 }
 0x20e   :  { %816 = vsyncpa [#allocation4 + $0x1], 1 }
 0x20f   :  { %817 = vsyncpa [#allocation9], 1 }
 0x210   :  { %819 = vsyncpa [#allocation9 + $0x1], 1 }

</bundles_post_ra>
